<compile_context>
chip_gen: v7x
topology: tpu7x:2x2x1
jax: 0.10.0
libtpu: 0.0.40
codegen_flags: <defaults>
</compile_context>

<pallas_src>
import jax
import jax.numpy as jnp
from jax.experimental import pallas as pl
from jax.experimental.pallas import tpu as pltpu

_LANES = 128  # lane width; batch tiles are multiples of this


def _round_up(x, m):
    return (x + m - 1) // m * m


def _pick_tile(batch, tb_max):
    """Batch tile: multiple of 128, large by default, >=2 tiles when possible."""
    tb_max = max(_LANES, (int(tb_max) // _LANES) * _LANES)
    br = _round_up(batch, _LANES)
    if br <= _LANES:
        return _LANES                      # small batch: single tile
    # Batch spans >1 lane-block: cap the tile so the 1-D "parallel" grid has at
    # least two entries and v7x megacore can shard it across both TensorCores.
    half = _round_up(pl.cdiv(br, 2), _LANES)
    return min(tb_max, half)


def critic_kernel(s_ref, a_ref, w1s_ref, w1a_ref, b1_ref, w2_ref, b2_ref,
                  w3_ref, b3_ref, out_ref):
    # fc1 on the (virtual) concat, without materializing it:
    #   h1 = state @ W1[:S] + action @ W1[S:] + b1    (f32 MXU, f32 accumulate)
    h1 = (
        jnp.dot(s_ref[...], w1s_ref[...], preferred_element_type=jnp.float32)
        + jnp.dot(a_ref[...], w1a_ref[...], preferred_element_type=jnp.float32)
        + b1_ref[...]
    )
    h1 = jnp.maximum(h1, 0.0)

    # fc2 + relu
    h2 = jnp.dot(h1, w2_ref[...], preferred_element_type=jnp.float32) + b2_ref[...]
    h2 = jnp.maximum(h2, 0.0)

    # q head, batch-on-lanes: (1, F2) . (TB, F2)^T -> (1, TB).
    # M=1 on the MXU is fine (huge MXU slack); the payoff is a lane-dense
    # 4 B/row output store instead of a 128-lane broadcast.
    q_t = jax.lax.dot_general(
        w3_ref[...], h2,
        dimension_numbers=(((1,), (1,)), ((), ())),
        preferred_element_type=jnp.float32,
    ) + b3_ref[0, 0]

    out_ref[...] = q_t.astype(out_ref.dtype)


def critic_forward(state, action, params, *, tb_max=2048):
    """Fused MADDPG-critic forward: q(state, action) -> (B, 1) float32."""
    w1, b1, w2, b2, w3, b3 = params
    B, S = state.shape
    A = action.shape[1]
    F1 = w1.shape[1]
    F2 = w2.shape[1]

    # Pre-slice the fc1 weight so the concat happens inside the kernel.
    w1s = w1[:S, :]
    w1a = w1[S:, :]
    w3_row = jnp.reshape(w3, (1, F2)).astype(jnp.float32)   # (F2, 1) -> (1, F2)
    b3_s = jnp.reshape(b3, (1, 1)).astype(jnp.float32)      # SMEM scalar

    # Batch tiling (TB is a multiple of 128; zero-padded rows are sliced off).
    TB = _pick_tile(B, tb_max)
    Bp = _round_up(B, TB)
    if Bp != B:
        pad = ((0, Bp - B), (0, 0))
        state = jnp.pad(state, pad)
        action = jnp.pad(action, pad)
    num_tiles = Bp // TB

    def batch_spec(width):
        return pl.BlockSpec((TB, width), lambda i: (i, 0))

    def const_spec(shape):
        # Constant block index -> fetched once, VMEM-resident across batch tiles.
        return pl.BlockSpec(shape, lambda i: (0, 0))

    out = pl.pallas_call(
        critic_kernel,
        out_shape=jax.ShapeDtypeStruct((1, Bp), jnp.float32),
        grid_spec=pltpu.PrefetchScalarGridSpec(
            num_scalar_prefetch=0,
            grid=(num_tiles,),
            in_specs=[
                batch_spec(S),                                       # state tile
                batch_spec(A),                                       # action tile
                const_spec((S, F1)),                                 # W1[:S]
                const_spec((A, F1)),                                 # W1[S:]
                const_spec((1, F1)),                                 # b1
                const_spec((F1, F2)),                                # W2
                const_spec((1, F2)),                                 # b2
                const_spec((1, F2)),                                 # W3 row
                pl.BlockSpec(memory_space=pltpu.MemorySpace.SMEM),   # b3 scalar
            ],
            out_specs=pl.BlockSpec((1, TB), lambda i: (0, i)),       # batch on lanes
        ),
        compiler_params=pltpu.CompilerParams(
            dimension_semantics=("parallel",),
        ),
    )(state, action, w1s, w1a, b1, w2, b2, w3_row, b3_s)

    return out.reshape(Bp, 1)[:B]


def init_params(key, input_dims, fc1_dim, fc2_dim):
    """Deterministic init mimicking nn.Linear's U(-1/sqrt(fan_in), 1/sqrt(fan_in)).
    Weights stored as [in_features, out_features] (transposed vs. PyTorch)."""
    ks = jax.random.split(key, 6)

    def lin(kw, kb, fan_in, fan_out):
        bound = 1.0 / jnp.sqrt(fan_in)
        w = jax.random.uniform(kw, (fan_in, fan_out), jnp.float32, -bound, bound)
        b = jax.random.uniform(kb, (1, fan_out), jnp.float32, -bound, bound)
        return w, b

    w1, b1 = lin(ks[0], ks[1], input_dims, fc1_dim)
    w2, b2 = lin(ks[2], ks[3], fc1_dim, fc2_dim)
    w3, b3 = lin(ks[4], ks[5], fc2_dim, 1)
    return (w1, b1, w2, b2, w3, b3)


def reference(state, action, params):
    """Pure-JAX f32 reference (HIGHEST precision so XLA doesn't drop to bf16)."""
    w1, b1, w2, b2, w3, b3 = params
    hi = jax.lax.Precision.HIGHEST
    x = jnp.concatenate([state, action], axis=1)
    h1 = jnp.maximum(jnp.dot(x, w1, precision=hi) + b1, 0.0)
    h2 = jnp.maximum(jnp.dot(h1, w2, precision=hi) + b2, 0.0)
    return jnp.dot(h2, w3, precision=hi) + b3


if __name__ == "__main__":
    key = jax.random.PRNGKey(0)
    k_state, k_action, k_params, k_state2, k_action2 = jax.random.split(key, 5)

    # Small MADDPG-like shapes: input_dims = state_dims + n_agents * n_actions
    batch = 8
    state_dims = 24
    action_dims = 8
    input_dims = state_dims + action_dims   # fc1 input = concat([state, action])
    fc1_dim = 64
    fc2_dim = 64
    # TODO(synk): fusing the n_agents per-agent critics along the output-feature
    # axis (F1/F2 -> 256, n_agents q columns) would fill the 256-wide MXU and
    # amortize the state/action reads across critics; single-critic kernel here.

    state = jax.random.normal(k_state, (batch, state_dims), jnp.float32)
    action = jax.random.normal(k_action, (batch, action_dims), jnp.float32)
    params = init_params(k_params, input_dims, fc1_dim, fc2_dim)

    q = jax.block_until_ready(critic_forward(state, action, params))
    assert q.shape == (batch, 1)
    ref = reference(state, action, params)
    assert jnp.allclose(q, ref, atol=2e-3, rtol=2e-3), "mismatch vs reference"

    # Second call exercises batch padding + the multi-tile (parallel) grid path:
    # 200 rows -> two 128-row tiles, so both v7x TensorCores get a tile.
    batch2 = 200
    state2 = jax.random.normal(k_state2, (batch2, state_dims), jnp.float32)
    action2 = jax.random.normal(k_action2, (batch2, action_dims), jnp.float32)
    q2 = jax.block_until_ready(critic_forward(state2, action2, params))
    ref2 = reference(state2, action2, params)
    assert q2.shape == (batch2, 1)
    assert jnp.allclose(q2, ref2, atol=2e-3, rtol=2e-3), "mismatch vs reference (tiled)"

    print("KERNEL_OK")
</pallas_src>

<mosaic_0001>
module attributes {stable_mosaic.version = 11 : i64} {
  func.func @critic_kernel(%arg0: i32, %arg1: memref<128x24xf32, #tpu.memory_space<vmem>>, %arg2: memref<128x8xf32, #tpu.memory_space<vmem>>, %arg3: memref<24x64xf32, #tpu.memory_space<vmem>>, %arg4: memref<8x64xf32, #tpu.memory_space<vmem>>, %arg5: memref<1x64xf32, #tpu.memory_space<vmem>>, %arg6: memref<64x64xf32, #tpu.memory_space<vmem>>, %arg7: memref<1x64xf32, #tpu.memory_space<vmem>>, %arg8: memref<1x64xf32, #tpu.memory_space<vmem>>, %arg9: memref<1x1xf32, #tpu.memory_space<smem>>, %arg10: memref<1x128xf32, #tpu.memory_space<vmem>>) attributes {dimension_semantics = [#tpu.dimension_semantics<parallel>], iteration_bounds = array<i64: 1>, scalar_prefetch = 0 : i64, scratch_operands = 0 : i64, tpu.core_type = #tpu.core_type<tc>, window_params = [{transform_indices = @transform_0, window_bounds = array<i64: 128, 24>}, {transform_indices = @transform_1, window_bounds = array<i64: 128, 8>}, {pipeline_mode = #tpu.pipeline_mode<synchronous>, transform_indices = @transform_2, window_bounds = array<i64: 24, 64>}, {pipeline_mode = #tpu.pipeline_mode<synchronous>, transform_indices = @transform_3, window_bounds = array<i64: 8, 64>}, {pipeline_mode = #tpu.pipeline_mode<synchronous>, transform_indices = @transform_4, window_bounds = array<i64: 1, 64>}, {pipeline_mode = #tpu.pipeline_mode<synchronous>, transform_indices = @transform_5, window_bounds = array<i64: 64, 64>}, {pipeline_mode = #tpu.pipeline_mode<synchronous>, transform_indices = @transform_6, window_bounds = array<i64: 1, 64>}, {pipeline_mode = #tpu.pipeline_mode<synchronous>, transform_indices = @transform_7, window_bounds = array<i64: 1, 64>}, {transform_indices = @transform_8, window_bounds = array<i64: 1, 1>}, {transform_indices = @transform_9, window_bounds = array<i64: 1, 128>}]} {
    %c0 = arith.constant 0 : index
    %c0_0 = arith.constant 0 : index
    %0 = vector.load %arg1[%c0, %c0_0] : memref<128x24xf32, #tpu.memory_space<vmem>>, vector<128x24xf32>
    %c0_1 = arith.constant 0 : index
    %c0_2 = arith.constant 0 : index
    %1 = vector.load %arg3[%c0_1, %c0_2] : memref<24x64xf32, #tpu.memory_space<vmem>>, vector<24x64xf32>
    %cst = arith.constant dense<0.000000e+00> : vector<128x64xf32>
    %2 = tpu.matmul %0, %1, %cst {dimension_numbers = #tpu.dot_dimension_numbers<[1], [0], [0], [1], [0, 0, 1, 1], [], []>} : vector<128x24xf32>, vector<24x64xf32>, vector<128x64xf32> -> vector<128x64xf32>
    %c0_3 = arith.constant 0 : index
    %c0_4 = arith.constant 0 : index
    %3 = vector.load %arg2[%c0_3, %c0_4] : memref<128x8xf32, #tpu.memory_space<vmem>>, vector<128x8xf32>
    %c0_5 = arith.constant 0 : index
    %c0_6 = arith.constant 0 : index
    %4 = vector.load %arg4[%c0_5, %c0_6] : memref<8x64xf32, #tpu.memory_space<vmem>>, vector<8x64xf32>
    %cst_7 = arith.constant dense<0.000000e+00> : vector<128x64xf32>
    %5 = tpu.matmul %3, %4, %cst_7 {dimension_numbers = #tpu.dot_dimension_numbers<[1], [0], [0], [1], [0, 0, 1, 1], [], []>} : vector<128x8xf32>, vector<8x64xf32>, vector<128x64xf32> -> vector<128x64xf32>
    %6 = arith.addf %2, %5 : vector<128x64xf32>
    %c0_8 = arith.constant 0 : index
    %c0_9 = arith.constant 0 : index
    %7 = vector.load %arg5[%c0_8, %c0_9] : memref<1x64xf32, #tpu.memory_space<vmem>>, vector<1x64xf32>
    %8 = vector.broadcast %7 : vector<1x64xf32> to vector<128x64xf32>
    %9 = arith.addf %6, %8 : vector<128x64xf32>
    %cst_10 = arith.constant 0.000000e+00 : f32
    %10 = vector.broadcast %cst_10 : f32 to vector<128x64xf32>
    %11 = arith.maximumf %9, %10 : vector<128x64xf32>
    %c0_11 = arith.constant 0 : index
    %c0_12 = arith.constant 0 : index
    %12 = vector.load %arg6[%c0_11, %c0_12] : memref<64x64xf32, #tpu.memory_space<vmem>>, vector<64x64xf32>
    %cst_13 = arith.constant dense<0.000000e+00> : vector<128x64xf32>
    %13 = tpu.matmul %11, %12, %cst_13 {dimension_numbers = #tpu.dot_dimension_numbers<[1], [0], [0], [1], [0, 0, 1, 1], [], []>} : vector<128x64xf32>, vector<64x64xf32>, vector<128x64xf32> -> vector<128x64xf32>
    %c0_14 = arith.constant 0 : index
    %c0_15 = arith.constant 0 : index
    %14 = vector.load %arg7[%c0_14, %c0_15] : memref<1x64xf32, #tpu.memory_space<vmem>>, vector<1x64xf32>
    %15 = vector.broadcast %14 : vector<1x64xf32> to vector<128x64xf32>
    %16 = arith.addf %13, %15 : vector<128x64xf32>
    %cst_16 = arith.constant 0.000000e+00 : f32
    %17 = vector.broadcast %cst_16 : f32 to vector<128x64xf32>
    %18 = arith.maximumf %16, %17 : vector<128x64xf32>
    %c0_17 = arith.constant 0 : index
    %c0_18 = arith.constant 0 : index
    %19 = vector.load %arg8[%c0_17, %c0_18] : memref<1x64xf32, #tpu.memory_space<vmem>>, vector<1x64xf32>
    %cst_19 = arith.constant dense<0.000000e+00> : vector<1x128xf32>
    %20 = tpu.matmul %19, %18, %cst_19 {dimension_numbers = #tpu.dot_dimension_numbers<[1], [1], [0], [0], [0, 0, 1, 0], [], []>} : vector<1x64xf32>, vector<128x64xf32>, vector<1x128xf32> -> vector<1x128xf32>
    %c0_20 = arith.constant 0 : index
    %c0_21 = arith.constant 0 : index
    %21 = memref.load %arg9[%c0_20, %c0_21] : memref<1x1xf32, #tpu.memory_space<smem>>
    %22 = vector.broadcast %21 : f32 to vector<1x128xf32>
    %23 = arith.addf %20, %22 : vector<1x128xf32>
    %c0_22 = arith.constant 0 : index
    %c0_23 = arith.constant 0 : index
    %24 = vector.load %arg10[%c0_22, %c0_23] : memref<1x128xf32, #tpu.memory_space<vmem>>, vector<1x128xf32>
    tpu.vector_store %arg10[%c0_22, %c0_23], %23 {strides = array<i32>} : memref<1x128xf32, #tpu.memory_space<vmem>>, vector<1x128xf32>,
    return
  }
  func.func @transform_0(%arg0: i32) -> (i32, i32) {
    %c0_i32 = arith.constant 0 : i32
    %c0_i32_0 = arith.constant 0 : i32
    return %arg0, %c0_i32 : i32, i32
  }
  func.func @transform_1(%arg0: i32) -> (i32, i32) {
    %c0_i32 = arith.constant 0 : i32
    %c0_i32_0 = arith.constant 0 : i32
    return %arg0, %c0_i32 : i32, i32
  }
  func.func @transform_2(%arg0: i32) -> (i32, i32) {
    %c0_i32 = arith.constant 0 : i32
    %c0_i32_0 = arith.constant 0 : i32
    %c0_i32_1 = arith.constant 0 : i32
    return %c0_i32, %c0_i32_0 : i32, i32
  }
  func.func @transform_3(%arg0: i32) -> (i32, i32) {
    %c0_i32 = arith.constant 0 : i32
    %c0_i32_0 = arith.constant 0 : i32
    %c0_i32_1 = arith.constant 0 : i32
    return %c0_i32, %c0_i32_0 : i32, i32
  }
  func.func @transform_4(%arg0: i32) -> (i32, i32) {
    %c0_i32 = arith.constant 0 : i32
    %c0_i32_0 = arith.constant 0 : i32
    %c0_i32_1 = arith.constant 0 : i32
    return %c0_i32, %c0_i32_0 : i32, i32
  }
  func.func @transform_5(%arg0: i32) -> (i32, i32) {
    %c0_i32 = arith.constant 0 : i32
    %c0_i32_0 = arith.constant 0 : i32
    %c0_i32_1 = arith.constant 0 : i32
    return %c0_i32, %c0_i32_0 : i32, i32
  }
  func.func @transform_6(%arg0: i32) -> (i32, i32) {
    %c0_i32 = arith.constant 0 : i32
    %c0_i32_0 = arith.constant 0 : i32
    %c0_i32_1 = arith.constant 0 : i32
    return %c0_i32, %c0_i32_0 : i32, i32
  }
  func.func @transform_7(%arg0: i32) -> (i32, i32) {
    %c0_i32 = arith.constant 0 : i32
    %c0_i32_0 = arith.constant 0 : i32
    %c0_i32_1 = arith.constant 0 : i32
    return %c0_i32, %c0_i32_0 : i32, i32
  }
  func.func @transform_8(%arg0: i32) -> (i32, i32) {
    %c0_i32 = arith.constant 0 : i32
    %c0_i32_0 = arith.constant 0 : i32
    %c0_i32_1 = arith.constant 0 : i32
    return %c0_i32, %c0_i32_0 : i32, i32
  }
  func.func @transform_9(%arg0: i32) -> (i32, i32) {
    %c0_i32 = arith.constant 0 : i32
    %c0_i32_0 = arith.constant 0 : i32
    return %c0_i32, %arg0 : i32, i32
  }
}

</mosaic_0001>

<bundles_post_ra>
// kernel: tpu_custom_call.1
= control target key start
LH: loop header
LB: loop body
LE: loop exit
PB: predicated region body
PF: predicated region fallthrough
CT: control target
= control target key end

     0   :  { %vm70_vm0 = vcmask 64512   ;;  %s1521_s0 = inlined_call_operand.vmem [shape: f32[128,24], index: 0, kind: input, shape index: {}]   ;;  %s1522_s1 = inlined_call_operand.vmem [shape: f32[128,8], index: 1, kind: input, shape index: {}]   ;;  %s1523_s2 = inlined_call_operand.vmem [shape: f32[24,64], index: 2, kind: input, shape index: {}]   ;;  %s1524_s3 = inlined_call_operand.vmem [shape: f32[8,64], index: 3, kind: input, shape index: {}]   ;;  %s1525_s4 = inlined_call_operand.vmem [shape: f32[1,64], index: 4, kind: input, shape index: {}]   ;;  %s1526_s5 = inlined_call_operand.vmem [shape: f32[64,64], index: 5, kind: input, shape index: {}]   ;;  %s1527_s6 = inlined_call_operand.vmem [shape: f32[1,64], index: 6, kind: input, shape index: {}]   ;;  %s1528_s7 = inlined_call_operand.vmem [shape: f32[1,64], index: 7, kind: input, shape index: {}]   ;;  %s1529_s8 = inlined_call_operand.<no memory space> [shape: f32[1,1], index: 8, kind: input, shape index: {}]   ;;  %s1530_s9 = inlined_call_operand.hbm [shape: f32[1,128], index: 9, kind: output, shape index: {}]  }
   0x1   :  { %v69_v0 = vld [vmem:[%s1524_s3] sm:$0xff]  ;;  %v54_v2 = vld [vmem:[%s1522_s1 + $0x8] sm:$0xff]  ;;  %v55_v5 = vld [vmem:[%s1522_s1 + $0x10] sm:$0xff] }
   0x2   :  { %v53_v1 = vld [vmem:[%s1522_s1] sm:$0xff]  ;;  %1005 = vmatprep.subr.mxu0 %v69_v0  ;;  %v51_v4 = vld [vmem:[%s1523_s2 + $0x8] sm:$0xff]  ;;  %v56_v7 = vld [vmem:[%s1522_s1 + $0x18] sm:$0xff] }
   0x3   :  { %1007 = vmatprep.mubr.msk.f32.mxu0 %vm70_vm0, %v53_v1  ;;  %v50_v3 = vld [vmem:[%s1523_s2] sm:$0xff]  ;;  %1006 = vmatpush3.msra.mxu0 %v69_v0  ;;  %v52_v8 = vld [vmem:[%s1523_s2 + $0x10] sm:$0xff]  ;;  %v58_v10 = vld [vmem:[%s1522_s1 + $0x28] sm:$0xff] }
   0x4   :  { %v1136_v6 = vpack.c.bf16 %v51_v4, %v50_v3  ;;  %1008 = vmatmul.mubr.msk.f32.vlgmr.msra.gmra.mrb[0].mxu0 %vm70_vm0, %v54_v2  ;;  %v57_v9 = vld [vmem:[%s1522_s1 + $0x20] sm:$0xff]  ;;  %v59_v11 = vld [vmem:[%s1522_s1 + $0x30] sm:$0xff]  ;;  %v60_v12 = vld [vmem:[%s1522_s1 + $0x38] sm:$0xff] }
   0x5   :  { %1010 = vmatprep.mubr.msk.f32.mxu0 %vm70_vm0, %v55_v5  ;;  %v497_v13 = vld [vmem:[%s1526_s5] sm:$0xff]  ;;  %v498_v14 = vld [vmem:[%s1526_s5 + $0x8] sm:$0xff]  ;;  %v499_v15 = vld [vmem:[%s1526_s5 + $0x10] sm:$0xff] }
   0x6   :  { %1137 = vmatprep.subr.bf16.mxu0 %v1136_v6  ;;  %v61_v16 = vld [vmem:[%s1522_s1 + $0x40] sm:$0xff]  ;;  %v1140_v17 = vpack.c.bf16 %v498_v14, %v497_v13  ;;  %v500_v18 = vld [vmem:[%s1526_s5 + $0x18] sm:$0xff]  ;;  %v502_v21 = vld [vmem:[%s1526_s5 + $0x28] sm:$0xff] }
   0x7   :  { %1139 = vmatpush3.bf16.msra.mxu0 %v1136_v6  ;;  %v1144_v19 = vpack.c.bf16 %v500_v18, %v499_v15  ;;  %v501_v20 = vld [vmem:[%s1526_s5 + $0x20] sm:$0xff] }
   0x8   :  { %1035 = vmatprep.subr.mxu0 %v52_v8  ;;  %1011 = vmatmul.mubr.msk.f32.gmra.mrb[2].mxu0 %vm70_vm0, %v56_v7 }
   0x9   :  { %1013 = vmatprep.mubr.msk.f32.mxu0 %vm70_vm0, %v57_v9 }
   0xb   :  { %1036 = vmatpush3.msra.mxu0 %v52_v8 }
   0xc   :  { %1014 = vmatmul.mubr.msk.f32.gmra.mrb[4].mxu0 %vm70_vm0, %v58_v10 }
   0xd   :  { %1016 = vmatprep.mubr.msk.f32.mxu0 %vm70_vm0, %v59_v11 }
   0xe   :  { %15 = vsyncpa [#allocation4], 0  ;;  %1141 = vmatprep.subr.bf16.mxu1 %v1140_v17  ;;  %v62_v22 = vld [vmem:[%s1522_s1 + $0x48] sm:$0xff]  ;;  %v63_v23 = vld [vmem:[%s1522_s1 + $0x50] sm:$0xff]  ;;  %v1148_v24 = vpack.c.bf16 %v502_v21, %v501_v20  ;;  %vm264_vm1 = vcmask 195584   ;;  %vm512_vm2 = vcmask 523264  }
   0xf   :  { %1143 = vmatpush3.bf16.msra.mxu1 %v1140_v17  ;;  %v64_v25 = vld [vmem:[%s1522_s1 + $0x58] sm:$0xff]  ;;  %v65_v26 = vld [vmem:[%s1522_s1 + $0x60] sm:$0xff]  ;;  %v66_v27 = vld [vmem:[%s1522_s1 + $0x68] sm:$0xff]  ;;  %vm1233_vm3 = vmmov 0   ;;  %s1235_s29 = smov [#allocation3]  }
  0x10   :  { %1017 = vmatmul.mubr.msk.f32.gmra.mrb[6].mxu0 %vm70_vm0, %v60_v12  ;;  %1145 = vmatprep.subr.bf16.mxu1 %v1144_v19  ;;  %v67_v28 = vld [vmem:[%s1522_s1 + $0x70] sm:$0xff]  ;;  %v68_v29 = vld [vmem:[%s1522_s1 + $0x78] sm:$0xff]  ;;  %v34_v30 = vld [vmem:[%s1521_s0] sm:$0xff]  ;;  %s853_s2 = sshll.u32 %s1235_s29, 4  ;;  %s854_s2 = int_to_ptr.vmem [resolvable:$true] %s853_s2 }
  0x11   :  { %1019 = vmatprep.mubr.msk.f32.mxu0 %vm70_vm0, %v61_v16  ;;  %v35_v31 = vld [vmem:[%s1521_s0 + $0x8] sm:$0xff]  ;;  %v36_v32 = vld [vmem:[%s1521_s0 + $0x10] sm:$0xff]  ;;  %v37_v33 = vld [vmem:[%s1521_s0 + $0x18] sm:$0xff]  ;;  %s1208_s30 = scalar_lea.vmem %s854_s2, 16  ;;  %s1212_s10 = scalar_lea.vmem %s854_s2, 32 }
  0x12   :  { %v38_v34 = vld [vmem:[%s1521_s0 + $0x20] sm:$0xff]  ;;  %v39_v35 = vld [vmem:[%s1521_s0 + $0x28] sm:$0xff]  ;;  %v40_v36 = vld [vmem:[%s1521_s0 + $0x30] sm:$0xff]  ;;  %p1209_p0 = scmp.ne.s32.totalorder %s854_s2, %s1208_s30  ;;  %p1213_p1 = scmp.lt.s32.totalorder %s854_s2, %s854_s2 }
  0x13   :  { %1147 = vmatpush3.bf16.msra.mxu1 %v1144_v19  ;;  %v41_v37 = vld [vmem:[%s1521_s0 + $0x38] sm:$0xff]  ;;  %v42_v38 = vld [vmem:[%s1521_s0 + $0x40] sm:$0xff]  ;;  %v43_v39 = vld [vmem:[%s1521_s0 + $0x48] sm:$0xff]  ;;  %p1214_p2 = scmp.lt.s32.totalorder %s1212_s10, %s1208_s30 }
  0x14   :  { %1020 = vmatmul.mubr.msk.f32.gmra.mrb[8].mxu0 %vm70_vm0, %v62_v22  ;;  %1149 = vmatprep.subr.bf16.mxu1 %v1148_v24  ;;  %v44_v40 = vld [vmem:[%s1521_s0 + $0x50] sm:$0xff]  ;;  %v45_v41 = vld [vmem:[%s1521_s0 + $0x58] sm:$0xff]  ;;  %v46_v42 = vld [vmem:[%s1521_s0 + $0x60] sm:$0xff] }
  0x15   :  { %1022 = vmatprep.mubr.msk.f32.mxu0 %vm70_vm0, %v63_v23  ;;  %v47_v43 = vld [vmem:[%s1521_s0 + $0x68] sm:$0xff]  ;;  %v48_v44 = vld [vmem:[%s1521_s0 + $0x70] sm:$0xff]  ;;  %v49_v45 = vld [vmem:[%s1521_s0 + $0x78] sm:$0xff]  ;;  %p1215_p3 = por %p1214_p2, %p1213_p1 }
  0x16   :  { %v503_v46 = vld [vmem:[%s1526_s5 + $0x30] sm:$0xff]  ;;  %v504_v47 = vld [vmem:[%s1526_s5 + $0x38] sm:$0xff]  ;;  %v893_v49 = vld [vmem:[%s1525_s4] ss:$0 sm:$0xff] }
  0x17   :  { %1151 = vmatpush3.bf16.msra.mxu1 %v1148_v24  ;;  %v1152_v48 = vpack.c.bf16 %v504_v47, %v503_v46  ;;  %vm1475_vm4 = vmpackc.low %vm512_vm2, %vm512_vm2  ;;  %p1216_p4 = pnand %p1215_p3, %p1209_p0 }
  0x18   :  { %1023 = vmatmul.mubr.msk.f32.gmra.mrb[10].mxu0 %vm70_vm0, %v64_v25 }
  0x19   :  { %1025 = vmatprep.mubr.msk.f32.mxu0 %vm70_vm0, %v65_v26  ;;  %1153 = vmatprep.subr.bf16.mxu1 %v1152_v48 }
  0x1b   :  { %1155 = vmatpush3.bf16.msra.mxu1 %v1152_v48 }
  0x1c   :  { %1026 = vmatmul.mubr.msk.f32.gmra.mrb[12].mxu0 %vm70_vm0, %v66_v27 }
  0x1d   :  { %1028 = vmatprep.mubr.msk.f32.mxu0 %vm70_vm0, %v67_v28 }
  0x20   :  { %1029 = vmatmul.mubr.msk.f32.gmra.mrb[14].mxu0 %vm70_vm0, %v68_v29 }
  0x21   :  { %1037 = vmatprep.mubr.msk.f32.mxu0 %vm264_vm1, %v34_v30 }
  0x24   :  { %1038 = vmatmul.mubr.msk.f32.vlgmr.msra.gmra.mrb[0].mxu0 %vm264_vm1, %v35_v31 }
  0x25   :  { %1040 = vmatprep.mubr.msk.f32.mxu0 %vm264_vm1, %v36_v32 }
  0x28   :  { %1041 = vmatmul.mubr.msk.f32.gmra.mrb[2].mxu0 %vm264_vm1, %v37_v33 }
  0x29   :  { %1043 = vmatprep.mubr.msk.f32.mxu0 %vm264_vm1, %v38_v34  ;;  %v1232_v34 = vmov 0.0|0.0  }
  0x2a   :  { %1156 = vmatprep.subr.bf16.mxu1 %v1232_v34 }
  0x2c   :  { %1044 = vmatmul.mubr.msk.f32.gmra.mrb[4].mxu0 %vm264_vm1, %v39_v35  ;;  %v1234_v35 = vmov 0.0  }
  0x2d   :  { %1046 = vmatprep.mubr.msk.f32.mxu0 %vm264_vm1, %v40_v36  ;;  %v894_v36 = vld [vmem:[%s1527_s6] ss:$0 sm:$0xff] }
  0x30   :  { %1047 = vmatmul.mubr.msk.f32.gmra.mrb[6].mxu0 %vm264_vm1, %v41_v37 }
  0x31   :  { %1049 = vmatprep.mubr.msk.f32.mxu0 %vm264_vm1, %v42_v38 }
  0x34   :  { %1050 = vmatmul.mubr.msk.f32.gmra.mrb[8].mxu0 %vm264_vm1, %v43_v39 }
  0x35   :  { %1052 = vmatprep.mubr.msk.f32.mxu0 %vm264_vm1, %v44_v40 }
  0x38   :  { %1053 = vmatmul.mubr.msk.f32.gmra.mrb[10].mxu0 %vm264_vm1, %v45_v41 }
  0x39   :  { %1055 = vmatprep.mubr.msk.f32.mxu0 %vm264_vm1, %v46_v42 }
  0x3c   :  { %1056 = vmatmul.mubr.msk.f32.gmra.mrb[12].mxu0 %vm264_vm1, %v47_v43 }
  0x3d   :  { %1058 = vmatprep.mubr.msk.f32.mxu0 %vm264_vm1, %v48_v44 }
  0x40   :  { %1059 = vmatmul.mubr.msk.f32.gmra.mrb[14].mxu0 %vm264_vm1, %v49_v45 }
  0xf7   :  { %v1039_v50 = vpop.f32.mrb[0].mxu0 }
  0xf8   :  { %v466_v51 = vadd.f32 %v1039_v50, %v893_v49  ;;  %v379_v52 = vpop.f32.mrb[1].mxu0 }
  0xf9   :  { %v465_v53 = vadd.f32 %v893_v49, %v379_v52 }
  0xfa   :  { %v482_v56 = vmax.f32 %v466_v51, 0.0 }
  0xfb   :  { %v481_v54 = vmax.f32 %v465_v53, 0.0  ;;  %v1042_v55 = vpop.f32.mrb[2].mxu0 }
  0xfc   :  { %v468_v57 = vadd.f32 %v1042_v55, %v893_v49  ;;  %v389_v58 = vpop.f32.mrb[3].mxu0 }
  0xfd   :  { %v467_v59 = vadd.f32 %v893_v49, %v389_v58  ;;  %1077 = vmatprep.mubr.msk.f32.mxu1 %vm512_vm2, %v481_v54 }
  0xfe   :  { %1078 = vmatmul.mubr.msk.f32.vlgmr.msra.gmra.mrb[0].mxu1 %vm512_vm2, %v482_v56  ;;  %v484_v62 = vmax.f32 %v468_v57, 0.0 }
  0xff   :  { %v483_v60 = vmax.f32 %v467_v59, 0.0  ;;  %v1045_v61 = vpop.f32.mrb[4].mxu0 }
 0x100   :  { %v470_v63 = vadd.f32 %v1045_v61, %v893_v49  ;;  %v399_v0 = vpop.f32.mrb[5].mxu0 }
 0x101   :  { %v469_v1 = vadd.f32 %v893_v49, %v399_v0  ;;  %1080 = vmatprep.mubr.msk.f32.mxu1 %vm512_vm2, %v483_v60 }
 0x102   :  { %1081 = vmatmul.mubr.msk.f32.gmra.mrb[2].mxu1 %vm512_vm2, %v484_v62  ;;  %v486_v4 = vmax.f32 %v470_v63, 0.0 }
 0x103   :  { %v485_v2 = vmax.f32 %v469_v1, 0.0  ;;  %v1048_v3 = vpop.f32.mrb[6].mxu0 }
 0x104   :  { %v472_v5 = vadd.f32 %v1048_v3, %v893_v49  ;;  %v409_v6 = vpop.f32.mrb[7].mxu0 }
 0x105   :  { %v471_v7 = vadd.f32 %v893_v49, %v409_v6  ;;  %1083 = vmatprep.mubr.msk.f32.mxu1 %vm512_vm2, %v485_v2 }
 0x106   :  { %1084 = vmatmul.mubr.msk.f32.gmra.mrb[4].mxu1 %vm512_vm2, %v486_v4  ;;  %v488_v10 = vmax.f32 %v472_v5, 0.0 }
 0x107   :  { %v487_v8 = vmax.f32 %v471_v7, 0.0  ;;  %v1051_v9 = vpop.f32.mrb[8].mxu0 }
 0x108   :  { %v474_v11 = vadd.f32 %v1051_v9, %v893_v49  ;;  %v419_v12 = vpop.f32.mrb[9].mxu0 }
 0x109   :  { %v473_v13 = vadd.f32 %v893_v49, %v419_v12  ;;  %1086 = vmatprep.mubr.msk.f32.mxu1 %vm512_vm2, %v487_v8 }
 0x10a   :  { %1087 = vmatmul.mubr.msk.f32.gmra.mrb[6].mxu1 %vm512_vm2, %v488_v10  ;;  %v490_v16 = vmax.f32 %v474_v11, 0.0 }
 0x10b   :  { %v489_v14 = vmax.f32 %v473_v13, 0.0  ;;  %v1054_v15 = vpop.f32.mrb[10].mxu0 }
 0x10c   :  { %v476_v17 = vadd.f32 %v1054_v15, %v893_v49  ;;  %v429_v18 = vpop.f32.mrb[11].mxu0 }
 0x10d   :  { %v475_v19 = vadd.f32 %v893_v49, %v429_v18  ;;  %1089 = vmatprep.mubr.msk.f32.mxu1 %vm512_vm2, %v489_v14 }
 0x10e   :  { %1090 = vmatmul.mubr.msk.f32.gmra.mrb[8].mxu1 %vm512_vm2, %v490_v16  ;;  %v492_v22 = vmax.f32 %v476_v17, 0.0 }
 0x10f   :  { %v491_v20 = vmax.f32 %v475_v19, 0.0  ;;  %v1057_v21 = vpop.f32.mrb[12].mxu0 }
 0x110   :  { %v478_v23 = vadd.f32 %v1057_v21, %v893_v49  ;;  %v439_v24 = vpop.f32.mrb[13].mxu0 }
 0x111   :  { %v477_v25 = vadd.f32 %v893_v49, %v439_v24  ;;  %1092 = vmatprep.mubr.msk.f32.mxu1 %vm512_vm2, %v491_v20 }
 0x112   :  { %1093 = vmatmul.mubr.msk.f32.gmra.mrb[10].mxu1 %vm512_vm2, %v492_v22  ;;  %v494_v28 = vmax.f32 %v478_v23, 0.0 }
 0x113   :  { %v493_v26 = vmax.f32 %v477_v25, 0.0  ;;  %v1060_v27 = vpop.f32.mrb[14].mxu0 }
 0x114   :  { %v480_v29 = vadd.f32 %v1060_v27, %v893_v49  ;;  %v449_v30 = vpop.f32.mrb[15].mxu0 }
 0x115   :  { %v479_v31 = vadd.f32 %v893_v49, %v449_v30  ;;  %1095 = vmatprep.mubr.msk.f32.mxu1 %vm512_vm2, %v493_v26  ;;  %v722_v30 = vld [vmem:[%s1528_s7] sm:$0x1] }
 0x116   :  { %1096 = vmatmul.mubr.msk.f32.gmra.mrb[12].mxu1 %vm512_vm2, %v494_v28  ;;  %v496_v33 = vmax.f32 %v480_v29, 0.0 }
 0x117   :  { %v495_v32 = vmax.f32 %v479_v31, 0.0  ;;  %v724_v31 = vstv %s1529_s8 }
 0x119   :  { %1098 = vmatprep.mubr.msk.f32.mxu1 %vm512_vm2, %v495_v32 }
 0x11a   :  { %1099 = vmatmul.mubr.msk.f32.gmra.mrb[14].mxu1 %vm512_vm2, %v496_v33 }
 0x11b   :  { %1133 = vmatprep.mubr.msk.f32.mxu1 %vm1233_vm3, %v1234_v35 }
 0x1d1   :  { %v1079_v37 = vpop.f32.mrb[0].mxu1 }
 0x1d2   :  { %v633_v38 = vadd.f32 %v1079_v37, %v894_v36  ;;  %v627_v39 = vpop.f32.mrb[1].mxu1 }
 0x1d3   :  { %v628_v40 = vadd.f32 %v894_v36, %v627_v39 }
 0x1d4   :  { %v707_v41 = vmax.f32 %v633_v38, 0.0 }
 0x1d5   :  { %v706_v42 = vmax.f32 %v628_v40, 0.0  ;;  %v1082_v43 = vpop.f32.mrb[2].mxu1 }
 0x1d6   :  { %v643_v44 = vadd.f32 %v1082_v43, %v894_v36  ;;  %v637_v45 = vpop.f32.mrb[3].mxu1 }
 0x1d7   :  { %v1157_v47 = vpack.c.bf16 %v707_v41, %v706_v42  ;;  %v638_v48 = vadd.f32 %v894_v36, %v637_v45 }
 0x1d8   :  { %v709_v49 = vmax.f32 %v643_v44, 0.0 }
 0x1d9   :  { %v708_v50 = vmax.f32 %v638_v48, 0.0  ;;  %v1085_v51 = vpop.f32.mrb[4].mxu1  ;;  %1159 = vmatpush3.bf16.xpose.msk.msra.mxu1 %vm1475_vm4, %v1157_v47 }
 0x1da   :  { %v653_v52 = vadd.f32 %v1085_v51, %v894_v36  ;;  %v647_v53 = vpop.f32.mrb[5].mxu1  ;;  %1160 = vmatprep.subr.bf16.mxu1 %v1232_v34 }
 0x1db   :  { %v1161_v54 = vpack.c.bf16 %v709_v49, %v708_v50  ;;  %v648_v55 = vadd.f32 %v894_v36, %v647_v53 }
 0x1dc   :  { %v711_v56 = vmax.f32 %v653_v52, 0.0 }
 0x1dd   :  { %v710_v57 = vmax.f32 %v648_v55, 0.0  ;;  %v1088_v58 = vpop.f32.mrb[6].mxu1 }
 0x1de   :  { %v663_v59 = vadd.f32 %v1088_v58, %v894_v36  ;;  %v657_v60 = vpop.f32.mrb[7].mxu1 }
 0x1df   :  { %v1165_v61 = vpack.c.bf16 %v711_v56, %v710_v57  ;;  %v658_v62 = vadd.f32 %v894_v36, %v657_v60 }
 0x1e0   :  { %v713_v63 = vmax.f32 %v663_v59, 0.0 }
 0x1e1   :  { %v712_v0 = vmax.f32 %v658_v62, 0.0  ;;  %v1091_v1 = vpop.f32.mrb[8].mxu1  ;;  %1163 = vmatpush3.bf16.xpose.msk.msra.mxu1 %vm1475_vm4, %v1161_v54 }
 0x1e2   :  { %v673_v2 = vadd.f32 %v1091_v1, %v894_v36  ;;  %v667_v3 = vpop.f32.mrb[9].mxu1  ;;  %1164 = vmatprep.subr.bf16.mxu1 %v1232_v34 }
 0x1e3   :  { %v1169_v4 = vpack.c.bf16 %v713_v63, %v712_v0  ;;  %v668_v5 = vadd.f32 %v894_v36, %v667_v3 }
 0x1e4   :  { %v715_v6 = vmax.f32 %v673_v2, 0.0 }
 0x1e5   :  { %v714_v7 = vmax.f32 %v668_v5, 0.0  ;;  %v1094_v8 = vpop.f32.mrb[10].mxu1 }
 0x1e6   :  { %v683_v9 = vadd.f32 %v1094_v8, %v894_v36  ;;  %v677_v10 = vpop.f32.mrb[11].mxu1 }
 0x1e7   :  { %v1173_v11 = vpack.c.bf16 %v715_v6, %v714_v7  ;;  %v678_v12 = vadd.f32 %v894_v36, %v677_v10 }
 0x1e8   :  { %v717_v13 = vmax.f32 %v683_v9, 0.0 }
 0x1e9   :  { %v716_v14 = vmax.f32 %v678_v12, 0.0  ;;  %v1097_v15 = vpop.f32.mrb[12].mxu1  ;;  %1167 = vmatpush3.bf16.xpose.msk.msra.mxu1 %vm1475_vm4, %v1165_v61 }
 0x1ea   :  { %v693_v16 = vadd.f32 %v1097_v15, %v894_v36  ;;  %v687_v17 = vpop.f32.mrb[13].mxu1  ;;  %1168 = vmatprep.subr.bf16.mxu1 %v1232_v34 }
 0x1eb   :  { %v1177_v18 = vpack.c.bf16 %v717_v13, %v716_v14  ;;  %v688_v19 = vadd.f32 %v894_v36, %v687_v17 }
 0x1ec   :  { %v719_v20 = vmax.f32 %v693_v16, 0.0 }
 0x1ed   :  { %v718_v21 = vmax.f32 %v688_v19, 0.0  ;;  %v1100_v22 = vpop.f32.mrb[14].mxu1 }
 0x1ee   :  { %v703_v23 = vadd.f32 %v1100_v22, %v894_v36  ;;  %v697_v24 = vpop.f32.mrb[15].mxu1 }
 0x1ef   :  { %v1181_v25 = vpack.c.bf16 %v719_v20, %v718_v21  ;;  %v698_v26 = vadd.f32 %v894_v36, %v697_v24 }
 0x1f0   :  { %v721_v27 = vmax.f32 %v703_v23, 0.0 }
 0x1f1   :  { %v720_v28 = vmax.f32 %v698_v26, 0.0  ;;  %1171 = vmatpush3.bf16.xpose.msk.msra.mxu1 %vm1475_vm4, %v1169_v4 }
 0x1f2   :  { %1172 = vmatprep.subr.bf16.mxu1 %v1232_v34 }
 0x1f3   :  { %v1185_v29 = vpack.c.bf16 %v721_v27, %v720_v28 }
 0x1f9   :  { %1175 = vmatpush3.bf16.xpose.msk.msra.mxu1 %vm1475_vm4, %v1173_v11 }
 0x1fa   :  { %1176 = vmatprep.subr.bf16.mxu1 %v1232_v34 }
 0x201   :  { %1179 = vmatpush3.bf16.xpose.msk.msra.mxu1 %vm1475_vm4, %v1177_v18 }
 0x202   :  { %1180 = vmatprep.subr.bf16.mxu1 %v1232_v34 }
 0x209   :  { %1183 = vmatpush3.bf16.xpose.msk.msra.mxu1 %vm1475_vm4, %v1181_v25 }
 0x20a   :  { %1184 = vmatprep.subr.bf16.mxu1 %v1232_v34 }
 0x211   :  { %1187 = vmatpush3.bf16.xpose.msk.msra.mxu1 %vm1475_vm4, %v1185_v29 }
 0x218   :  { %1134 = vmatmul.mubr.msk.f32.vlgmr.msra.gmra.mrb[16].mxu1 %vm512_vm2, %v722_v30 }
 0x2eb   :  { %v842_v32 = vpop.f32.mrb[16].mxu1 }
 0x2ec   :  { %v843_v33 = vadd.f32 %v842_v32, %v724_v31  ;;  %v1135_v35 = vpop.f32.mrb[17].mxu1 }
 0x2ee   :  { %846 = vst [vmem:[#allocation3] sm:$0x1] %v843_v33 }
 0x2ef   :  { %1219 = shalt.err (!%p1216_p4)
}
 0x2f0   :  { %s1220_s12 = scalar_lea.hbm %s1530_s9, 16 }
 0x2f1   :  { %p1221_p5 = scmp.ne.s32.totalorder %s1530_s9, %s1220_s12  ;;  %p1224_p6 = scmp.lt.u32.totalorder %s1220_s12, %s1530_s9 }
 0x2f3   :  { %p1226_p7 = pnand %p1224_p6, %p1221_p5 }
 0x2f5   :  { %1229 = shalt.err (!%p1226_p7)
}
 0x2f6   :  { %856 = dma.vmem_to_hbm [thread:$0]  %s854_s2, 16, %s1530_s9, [#allocation4]  }
 0x2f7   :  { %1230 = dma.done.wait [#allocation4], 16  }
 0x2f8   :  { %1231 = vsyncadd [#allocation4], 4294967280 }
 0x2f9   :  { %860 = vsyncpa [#allocation4], 1 }

</bundles_post_ra>
